<compile_context>
chip_gen: v6e
topology: v6e:2x2x1
jax: 0.10.0
libtpu: 0.0.40
codegen_flags: <defaults>
</compile_context>

<pallas_src>
import functools

import jax
import jax.numpy as jnp
from jax.experimental import pallas as pl
from jax.experimental.pallas import tpu as pltpu

N_STATE = 4      # len(env.observation_space.sample()) for CartPole-v1
N_ACTIONS = 2    # env.action_space.n for CartPole-v1
HIDDEN = 256

N_STATE_PAD = 8      # f32 sublane tile
N_ACT_PAD = 128      # lane tile -> lane-dense (unmasked) output stores


def _round_up(x, m):
    return (x + m - 1) // m * m


def qnet_kernel(x_ref, w1_ref, b1_ref, w2_ref, b2_ref, o_ref):
    """Fused fc1 -> relu -> fc2 on one batch tile.

    fc1 (K=4) as 4 VPU broadcast-FMAs; fc2 on the MXU with a lane-dense
    padded N=128 so the output store is an unmasked vst.
    """
    x = x_ref[...]                        # [tm, 8]   (features 4..7 are zero)
    w1 = w1_ref[...]                      # [8, 256]  (rows 4..7 are zero)
    h = b1_ref[...]                       # [1, 256]  -> broadcasts to [tm, 256]
    for k in range(N_STATE):              # 4 VPU FMAs (static unroll)
        h = h + x[:, k:k + 1] * w1[k:k + 1, :]
    h = jnp.maximum(h, 0.0)               # relu
    # fc2: [tm, 256] @ [256, 128] + [1, 128]  (MXU, f32 accumulate)
    out = jnp.dot(h, w2_ref[...], preferred_element_type=jnp.float32) + b2_ref[...]
    o_ref[...] = out.astype(o_ref.dtype)


@functools.partial(jax.jit, static_argnames=("block_b",))
def qnet_forward(x, w1, b1, w2, b2, *, block_b=512):
    """out[b, a] = fc2(relu(fc1(x)))[b, a], identical to the PyTorch module."""
    B = x.shape[0]
    tm = min(block_b, _round_up(B, 8))       # batch tile (multiple of 8)
    B_pad = _round_up(B, tm)

    # Zero-pad tiny dims to hardware tiles (padded rows/cols contribute 0).
    x_pad = jnp.pad(x.astype(jnp.float32),
                    ((0, B_pad - B), (0, N_STATE_PAD - N_STATE)))
    w1_pad = jnp.pad(w1, ((0, N_STATE_PAD - N_STATE), (0, 0)))     # [8, 256]
    w2_pad = jnp.pad(w2, ((0, 0), (0, N_ACT_PAD - N_ACTIONS)))     # [256, 128]
    b2_pad = jnp.pad(b2, ((0, 0), (0, N_ACT_PAD - N_ACTIONS)))     # [1, 128]

    grid = (B_pad // tm,)
    flops = 2 * B_pad * (N_STATE * HIDDEN + HIDDEN * N_ACT_PAD)
    bytes_accessed = 4 * (x_pad.size + w1_pad.size + b1.size
                          + w2_pad.size + b2_pad.size + B_pad * N_ACT_PAD)

    out = pl.pallas_call(
        qnet_kernel,
        out_shape=jax.ShapeDtypeStruct((B_pad, N_ACT_PAD), jnp.float32),
        grid=grid,
        in_specs=[
            pl.BlockSpec((tm, N_STATE_PAD), lambda i: (i, 0)),       # x tile
            pl.BlockSpec((N_STATE_PAD, HIDDEN), lambda i: (0, 0)),   # w1 resident
            pl.BlockSpec((1, HIDDEN), lambda i: (0, 0)),             # b1 resident
            pl.BlockSpec((HIDDEN, N_ACT_PAD), lambda i: (0, 0)),     # w2 resident
            pl.BlockSpec((1, N_ACT_PAD), lambda i: (0, 0)),          # b2 resident
        ],
        out_specs=pl.BlockSpec((tm, N_ACT_PAD), lambda i: (i, 0)),
        compiler_params=pltpu.CompilerParams(
            dimension_semantics=("parallel",)),  # batch tiles across TCs on v7x
        cost_estimate=pl.CostEstimate(
            flops=flops, transcendentals=0, bytes_accessed=bytes_accessed),
    )(x_pad, w1_pad, b1, w2_pad, b2_pad)

    # Free XLA slice: drop padded batch rows and padded action columns.
    return out[:B, :N_ACTIONS]


def init_params(key):
    """Deterministic init mimicking torch.nn.Linear's U(-1/sqrt(fan_in), +1/sqrt(fan_in))."""
    k1, k2, k3, k4 = jax.random.split(key, 4)
    bound1 = 1.0 / jnp.sqrt(jnp.float32(N_STATE))
    bound2 = 1.0 / jnp.sqrt(jnp.float32(HIDDEN))
    # Stored as [in, out] (transpose of torch's [out, in]) for row-major matmul.
    w1 = jax.random.uniform(k1, (N_STATE, HIDDEN), jnp.float32, -bound1, bound1)
    b1 = jax.random.uniform(k2, (1, HIDDEN), jnp.float32, -bound1, bound1)
    w2 = jax.random.uniform(k3, (HIDDEN, N_ACTIONS), jnp.float32, -bound2, bound2)
    b2 = jax.random.uniform(k4, (1, N_ACTIONS), jnp.float32, -bound2, bound2)
    return w1, b1, w2, b2


def qnet_ref(x, w1, b1, w2, b2):
    """Pure-JAX reference for correctness check."""
    h = jnp.maximum(x @ w1 + b1, 0.0)
    return h @ w2 + b2


if __name__ == "__main__":
    key = jax.random.PRNGKey(0)
    kx, kp, kb = jax.random.split(key, 3)

    w1, b1, w2, b2 = init_params(kp)

    # Small batch (single grid step).
    batch = 8
    x = jax.random.normal(kx, (batch, N_STATE), jnp.float32)
    out = jax.block_until_ready(qnet_forward(x, w1, b1, w2, b2))
    ref = qnet_ref(x, w1, b1, w2, b2)
    assert out.shape == (batch, N_ACTIONS), out.shape
    assert jnp.allclose(out, ref, atol=1e-5, rtol=1e-5), "small-batch mismatch"

    # Larger (replay-buffer style) batch exercising the batch-tiled grid path.
    big_batch = 1000
    xb = jax.random.normal(kb, (big_batch, N_STATE), jnp.float32)
    out_b = jax.block_until_ready(qnet_forward(xb, w1, b1, w2, b2))
    ref_b = qnet_ref(xb, w1, b1, w2, b2)
    assert out_b.shape == (big_batch, N_ACTIONS), out_b.shape
    assert jnp.allclose(out_b, ref_b, atol=1e-4, rtol=1e-5), "big-batch mismatch"

    print("KERNEL_OK")
</pallas_src>

<mosaic_0001>
module attributes {stable_mosaic.version = 11 : i64} {
  func.func @qnet_kernel(%arg0: i32, %arg1: memref<8x8xf32, #tpu.memory_space<vmem>>, %arg2: memref<8x256xf32, #tpu.memory_space<vmem>>, %arg3: memref<1x256xf32, #tpu.memory_space<vmem>>, %arg4: memref<256x128xf32, #tpu.memory_space<vmem>>, %arg5: memref<1x128xf32, #tpu.memory_space<vmem>>, %arg6: memref<8x128xf32, #tpu.memory_space<vmem>>) attributes {dimension_semantics = [#tpu.dimension_semantics<parallel>], iteration_bounds = array<i64: 1>, scalar_prefetch = 0 : i64, scratch_operands = 0 : i64, tpu.core_type = #tpu.core_type<tc>, window_params = [{transform_indices = @transform_0, window_bounds = array<i64: 8, 8>}, {pipeline_mode = #tpu.pipeline_mode<synchronous>, transform_indices = @transform_1, window_bounds = array<i64: 8, 256>}, {pipeline_mode = #tpu.pipeline_mode<synchronous>, transform_indices = @transform_2, window_bounds = array<i64: 1, 256>}, {pipeline_mode = #tpu.pipeline_mode<synchronous>, transform_indices = @transform_3, window_bounds = array<i64: 256, 128>}, {pipeline_mode = #tpu.pipeline_mode<synchronous>, transform_indices = @transform_4, window_bounds = array<i64: 1, 128>}, {transform_indices = @transform_5, window_bounds = array<i64: 8, 128>}]} {
    %c0 = arith.constant 0 : index
    %c0_0 = arith.constant 0 : index
    %0 = vector.load %arg1[%c0, %c0_0] : memref<8x8xf32, #tpu.memory_space<vmem>>, vector<8x8xf32>
    %c0_1 = arith.constant 0 : index
    %c0_2 = arith.constant 0 : index
    %1 = vector.load %arg2[%c0_1, %c0_2] : memref<8x256xf32, #tpu.memory_space<vmem>>, vector<8x256xf32>
    %c0_3 = arith.constant 0 : index
    %c0_4 = arith.constant 0 : index
    %2 = vector.load %arg3[%c0_3, %c0_4] : memref<1x256xf32, #tpu.memory_space<vmem>>, vector<1x256xf32>
    %3 = vector.extract_strided_slice %0 {offsets = [0, 0], sizes = [8, 1], strides = [1, 1]} : vector<8x8xf32> to vector<8x1xf32>
    %4 = vector.extract_strided_slice %1 {offsets = [0, 0], sizes = [1, 256], strides = [1, 1]} : vector<8x256xf32> to vector<1x256xf32>
    %5 = vector.broadcast %3 : vector<8x1xf32> to vector<8x256xf32>
    %6 = vector.broadcast %4 : vector<1x256xf32> to vector<8x256xf32>
    %7 = arith.mulf %5, %6 : vector<8x256xf32>
    %8 = vector.broadcast %2 : vector<1x256xf32> to vector<8x256xf32>
    %9 = arith.addf %8, %7 : vector<8x256xf32>
    %10 = vector.extract_strided_slice %0 {offsets = [0, 1], sizes = [8, 1], strides = [1, 1]} : vector<8x8xf32> to vector<8x1xf32>
    %11 = vector.extract_strided_slice %1 {offsets = [1, 0], sizes = [1, 256], strides = [1, 1]} : vector<8x256xf32> to vector<1x256xf32>
    %12 = vector.broadcast %10 : vector<8x1xf32> to vector<8x256xf32>
    %13 = vector.broadcast %11 : vector<1x256xf32> to vector<8x256xf32>
    %14 = arith.mulf %12, %13 : vector<8x256xf32>
    %15 = arith.addf %9, %14 : vector<8x256xf32>
    %16 = vector.extract_strided_slice %0 {offsets = [0, 2], sizes = [8, 1], strides = [1, 1]} : vector<8x8xf32> to vector<8x1xf32>
    %17 = vector.extract_strided_slice %1 {offsets = [2, 0], sizes = [1, 256], strides = [1, 1]} : vector<8x256xf32> to vector<1x256xf32>
    %18 = vector.broadcast %16 : vector<8x1xf32> to vector<8x256xf32>
    %19 = vector.broadcast %17 : vector<1x256xf32> to vector<8x256xf32>
    %20 = arith.mulf %18, %19 : vector<8x256xf32>
    %21 = arith.addf %15, %20 : vector<8x256xf32>
    %22 = vector.extract_strided_slice %0 {offsets = [0, 3], sizes = [8, 1], strides = [1, 1]} : vector<8x8xf32> to vector<8x1xf32>
    %23 = vector.extract_strided_slice %1 {offsets = [3, 0], sizes = [1, 256], strides = [1, 1]} : vector<8x256xf32> to vector<1x256xf32>
    %24 = vector.broadcast %22 : vector<8x1xf32> to vector<8x256xf32>
    %25 = vector.broadcast %23 : vector<1x256xf32> to vector<8x256xf32>
    %26 = arith.mulf %24, %25 : vector<8x256xf32>
    %27 = arith.addf %21, %26 : vector<8x256xf32>
    %cst = arith.constant 0.000000e+00 : f32
    %28 = vector.broadcast %cst : f32 to vector<8x256xf32>
    %29 = arith.maximumf %27, %28 : vector<8x256xf32>
    %c0_5 = arith.constant 0 : index
    %c0_6 = arith.constant 0 : index
    %30 = vector.load %arg4[%c0_5, %c0_6] : memref<256x128xf32, #tpu.memory_space<vmem>>, vector<256x128xf32>
    %cst_7 = arith.constant dense<0.000000e+00> : vector<8x128xf32>
    %31 = tpu.matmul %29, %30, %cst_7 {dimension_numbers = #tpu.dot_dimension_numbers<[1], [0], [0], [1], [0, 0, 1, 1], [], []>} : vector<8x256xf32>, vector<256x128xf32>, vector<8x128xf32> -> vector<8x128xf32>
    %c0_8 = arith.constant 0 : index
    %c0_9 = arith.constant 0 : index
    %32 = vector.load %arg5[%c0_8, %c0_9] : memref<1x128xf32, #tpu.memory_space<vmem>>, vector<1x128xf32>
    %33 = vector.broadcast %32 : vector<1x128xf32> to vector<8x128xf32>
    %34 = arith.addf %31, %33 : vector<8x128xf32>
    %c0_10 = arith.constant 0 : index
    %c0_11 = arith.constant 0 : index
    %35 = vector.load %arg6[%c0_10, %c0_11] : memref<8x128xf32, #tpu.memory_space<vmem>>, vector<8x128xf32>
    tpu.vector_store %arg6[%c0_10, %c0_11], %34 {strides = array<i32>} : memref<8x128xf32, #tpu.memory_space<vmem>>, vector<8x128xf32>,
    return
  }
  func.func @transform_0(%arg0: i32) -> (i32, i32) {
    %c0_i32 = arith.constant 0 : i32
    %c0_i32_0 = arith.constant 0 : i32
    return %arg0, %c0_i32 : i32, i32
  }
  func.func @transform_1(%arg0: i32) -> (i32, i32) {
    %c0_i32 = arith.constant 0 : i32
    %c0_i32_0 = arith.constant 0 : i32
    %c0_i32_1 = arith.constant 0 : i32
    return %c0_i32, %c0_i32_0 : i32, i32
  }
  func.func @transform_2(%arg0: i32) -> (i32, i32) {
    %c0_i32 = arith.constant 0 : i32
    %c0_i32_0 = arith.constant 0 : i32
    %c0_i32_1 = arith.constant 0 : i32
    return %c0_i32, %c0_i32_0 : i32, i32
  }
  func.func @transform_3(%arg0: i32) -> (i32, i32) {
    %c0_i32 = arith.constant 0 : i32
    %c0_i32_0 = arith.constant 0 : i32
    %c0_i32_1 = arith.constant 0 : i32
    return %c0_i32, %c0_i32_0 : i32, i32
  }
  func.func @transform_4(%arg0: i32) -> (i32, i32) {
    %c0_i32 = arith.constant 0 : i32
    %c0_i32_0 = arith.constant 0 : i32
    %c0_i32_1 = arith.constant 0 : i32
    return %c0_i32, %c0_i32_0 : i32, i32
  }
  func.func @transform_5(%arg0: i32) -> (i32, i32) {
    %c0_i32 = arith.constant 0 : i32
    %c0_i32_0 = arith.constant 0 : i32
    return %arg0, %c0_i32 : i32, i32
  }
}

</mosaic_0001>

<bundles_post_ra>
// kernel: qnet_forward.1
= control target key start
LH: loop header
LB: loop body
LE: loop exit
PB: predicated region body
PF: predicated region fallthrough
CT: control target
= control target key end

     0   :  { %v261_v0 = vmov 0   ;;  %v262_v2 = vmov 2   ;;  %v263_v7 = vmov 1   ;;  %v264_v8 = vmov 3   ;;  %s409_s0 = inlined_call_operand.vmem [shape: f32[8,8], index: 0, kind: input, shape index: {}]   ;;  %s410_s3 = inlined_call_operand.vmem [shape: f32[256,128], index: 3, kind: input, shape index: {}]   ;;  %s411_s1 = inlined_call_operand.vmem [shape: f32[8,256], index: 1, kind: input, shape index: {}]   ;;  %s412_s2 = inlined_call_operand.vmem [shape: f32[1,256], index: 2, kind: input, shape index: {}]   ;;  %s413_s4 = inlined_call_operand.vmem [shape: f32[1,128], index: 4, kind: input, shape index: {}]   ;;  %s414_s5 = inlined_call_operand.vmem [shape: f32[8,128], index: 5, kind: output, shape index: {}]  }
   0x1   :  { %256 = vset.pattern.permute.xlu0 %v261_v0  ;;  %v20_v1 = vld [vmem:[%s409_s0] sm:$0xff]  ;;  %258 = vset.pattern.permute.xlu1 %v262_v2  ;;  %v133_v3 = vld [vmem:[%s410_s3 + $0xf8] sm:$0xff]  ;;  %v132_v5 = vld [vmem:[%s410_s3 + $0xf0] sm:$0xff]  ;;  %v29_v37 = vlaneseq }
   0x2   :  { %v117_v4 = vld [vmem:[%s410_s3 + $0x78] sm:$0xff]  ;;  %26 = vperm.xlu0 %256, %v20_v1   ;;  %69 = vperm.xlu1 %258, %v20_v1   ;;  %v116_v6 = vld [vmem:[%s410_s3 + $0x70] sm:$0xff]  ;;  %v131_v9 = vld [vmem:[%s410_s3 + $0xe8] sm:$0xff] }
   0x3   :  { %217 = vmatprep.subr.mxu0 %v133_v3  ;;  %v115_v10 = vld [vmem:[%s410_s3 + $0x68] sm:$0xff]  ;;  %v130_v11 = vld [vmem:[%s410_s3 + $0xe0] sm:$0xff]  ;;  %v129_v13 = vld [vmem:[%s410_s3 + $0xd8] sm:$0xff]  ;;  %v30_v38 = vshrl.u32 %v29_v37, 7 }
   0x4   :  { %218 = vmatpush3.msra.mxu0 %v117_v4  ;;  %v114_v12 = vld [vmem:[%s410_s3 + $0x60] sm:$0xff]  ;;  %v113_v14 = vld [vmem:[%s410_s3 + $0x58] sm:$0xff]  ;;  %v128_v15 = vld [vmem:[%s410_s3 + $0xd0] sm:$0xff] }
   0x5   :  { %219 = vmatprep.subr.mxu0 %v132_v5  ;;  %v112_v16 = vld [vmem:[%s410_s3 + $0x50] sm:$0xff]  ;;  %v127_v17 = vld [vmem:[%s410_s3 + $0xc8] sm:$0xff]  ;;  %v126_v19 = vld [vmem:[%s410_s3 + $0xc0] sm:$0xff]  ;;  %v31_v39 = vsub.s32 0, %v30_v38  ;;  %v46_v45 = vsub.s32 1, %v30_v38  ;;  %v74_v46 = vsub.s32 2, %v30_v38 }
   0x6   :  { %257 = vset.pattern.permute.xlu0 %v263_v7  ;;  %259 = vset.pattern.permute.xlu1 %v264_v8  ;;  %v111_v18 = vld [vmem:[%s410_s3 + $0x48] sm:$0xff]  ;;  %v110_v20 = vld [vmem:[%s410_s3 + $0x40] sm:$0xff]  ;;  %v125_v21 = vld [vmem:[%s410_s3 + $0xb8] sm:$0xff]  ;;  %v90_v49 = vsub.s32 3, %v30_v38 }
   0x7   :  { %53 = vperm.xlu0 %257, %v20_v1   ;;  %85 = vperm.xlu1 %259, %v20_v1   ;;  %v109_v22 = vld [vmem:[%s410_s3 + $0x38] sm:$0xff]  ;;  %v124_v23 = vld [vmem:[%s410_s3 + $0xb0] sm:$0xff]  ;;  %v123_v25 = vld [vmem:[%s410_s3 + $0xa8] sm:$0xff] }
   0x8   :  { %220 = vmatpush3.msra.mxu0 %v116_v6  ;;  %v108_v24 = vld [vmem:[%s410_s3 + $0x30] sm:$0xff]  ;;  %v107_v26 = vld [vmem:[%s410_s3 + $0x28] sm:$0xff]  ;;  %v122_v27 = vld [vmem:[%s410_s3 + $0xa0] sm:$0xff] }
   0x9   :  { %221 = vmatprep.subr.mxu0 %v131_v9  ;;  %v106_v28 = vld [vmem:[%s410_s3 + $0x20] sm:$0xff]  ;;  %v121_v29 = vld [vmem:[%s410_s3 + $0x98] sm:$0xff]  ;;  %v120_v31 = vld [vmem:[%s410_s3 + $0x90] sm:$0xff] }
   0xa   :  { %222 = vmatpush3.msra.mxu0 %v115_v10  ;;  %v105_v30 = vld [vmem:[%s410_s3 + $0x18] sm:$0xff]  ;;  %v104_v32 = vld [vmem:[%s410_s3 + $0x10] sm:$0xff]  ;;  %v119_v33 = vld [vmem:[%s410_s3 + $0x88] sm:$0xff] }
   0xb   :  { %223 = vmatprep.subr.mxu0 %v130_v11  ;;  %260 = vset.pattern.permute.xlu0 %v264_v8  ;;  %v103_v34 = vld [vmem:[%s410_s3 + $0x8] sm:$0xff]  ;;  %v118_v35 = vld [vmem:[%s410_s3 + $0x80] sm:$0xff] }
   0xc   :  { %224 = vmatpush3.msra.mxu0 %v114_v12  ;;  %v102_v36 = vld [vmem:[%s410_s3] sm:$0xff]  ;;  %v22_v41 = vld [vmem:[%s411_s1 + $0x8] sm:$0xff] }
   0xd   :  { %225 = vmatprep.subr.mxu0 %v129_v13  ;;  %v21_v40 = vld [vmem:[%s411_s1] sm:$0xff]  ;;  %v36_v44 = vrot.slane %v22_v41, %v31_v39  ;;  %v63_v55 = vrot.slane %v22_v41, %v46_v45  ;;  %v79_v57 = vrot.slane %v22_v41, %v74_v46  ;;  %v95_v59 = vrot.slane %v22_v41, %v90_v49 }
   0xe   :  { %226 = vmatpush3.msra.mxu0 %v113_v14  ;;  %v23_v42 = vld [vmem:[%s412_s2] sm:$0x3]  ;;  %v32_v43 = vrot.slane %v21_v40, %v31_v39  ;;  %v59_v51 = vrot.slane %v21_v40, %v46_v45  ;;  %v75_v56 = vrot.slane %v21_v40, %v74_v46  ;;  %v91_v58 = vrot.slane %v21_v40, %v90_v49 }
   0xf   :  { %227 = vmatprep.subr.mxu0 %v128_v15  ;;  %v43_v50 = vrot.slane %v23_v42, %v31_v39  ;;  %v47_v52 = vrot.slane %v23_v42, %v46_v45  ;;  %v216_v15 = vld [vmem:[%s413_s4] ss:$0 sm:$0xff] }
  0x10   :  { %228 = vmatpush3.msra.mxu0 %v112_v16 }
  0x11   :  { %229 = vmatprep.subr.mxu0 %v127_v17 }
  0x12   :  { %230 = vmatpush3.msra.mxu0 %v111_v18 }
  0x13   :  { %231 = vmatprep.subr.mxu0 %v126_v19 }
  0x14   :  { %232 = vmatpush3.msra.mxu0 %v110_v20 }
  0x15   :  { %233 = vmatprep.subr.mxu0 %v125_v21 }
  0x16   :  { %234 = vmatpush3.msra.mxu0 %v109_v22 }
  0x17   :  { %235 = vmatprep.subr.mxu0 %v124_v23 }
  0x18   :  { %236 = vmatpush3.msra.mxu0 %v108_v24 }
  0x19   :  { %237 = vmatprep.subr.mxu0 %v123_v25 }
  0x1a   :  { %238 = vmatpush3.msra.mxu0 %v107_v26 }
  0x1b   :  { %239 = vmatprep.subr.mxu0 %v122_v27 }
  0x1c   :  { %240 = vmatpush3.msra.mxu0 %v106_v28 }
  0x1d   :  { %241 = vmatprep.subr.mxu0 %v121_v29 }
  0x1e   :  { %242 = vmatpush3.msra.mxu0 %v105_v30 }
  0x1f   :  { %243 = vmatprep.subr.mxu0 %v120_v31 }
  0x20   :  { %244 = vmatpush3.msra.mxu0 %v104_v32 }
  0x21   :  { %245 = vmatprep.subr.mxu0 %v119_v33 }
  0x22   :  { %246 = vmatpush3.msra.mxu0 %v103_v34 }
  0x23   :  { %247 = vmatprep.subr.mxu0 %v118_v35 }
  0x24   :  { %248 = vmatpush3.msra.mxu0 %v102_v36 }
  0x7d   :  { %v27_v47 = vpop.permute.xlu0 %26  ;;  %v70_v48 = vpop.permute.xlu1 %69 }
  0x7e   :  { %v37_v53 = vmul.f32 %v32_v43, %v27_v47  ;;  %v38_v54 = vmul.f32 %v36_v44, %v27_v47  ;;  %v80_v2 = vmul.f32 %v75_v56, %v70_v48  ;;  %v81_v3 = vmul.f32 %v79_v57, %v70_v48 }
  0x80   :  { %v50_v62 = vadd.f32 %v43_v50, %v37_v53  ;;  %v51_v63 = vadd.f32 %v47_v52, %v38_v54 }
  0x82   :  { %v54_v60 = vpop.permute.xlu0 %53  ;;  %v86_v61 = vpop.permute.xlu1 %85 }
  0x83   :  { %v64_v0 = vmul.f32 %v59_v51, %v54_v60  ;;  %v65_v1 = vmul.f32 %v63_v55, %v54_v60  ;;  %v96_v6 = vmul.f32 %v91_v58, %v86_v61  ;;  %v97_v7 = vmul.f32 %v95_v59, %v86_v61 }
  0x85   :  { %v66_v4 = vadd.f32 %v64_v0, %v50_v62  ;;  %v67_v5 = vadd.f32 %v65_v1, %v51_v63 }
  0x87   :  { %v82_v8 = vadd.f32 %v80_v2, %v66_v4  ;;  %v83_v9 = vadd.f32 %v81_v3, %v67_v5 }
  0x89   :  { %v98_v10 = vadd.f32 %v96_v6, %v82_v8  ;;  %v99_v11 = vadd.f32 %v97_v7, %v83_v9 }
  0x8b   :  { %v100_v12 = vmax.f32 %v98_v10, 0.0  ;;  %v101_v13 = vmax.f32 %v99_v11, 0.0 }
  0x8d   :  { %205 = vmatprep.mubr.f32.mxu0 %v101_v13 }
  0x8e   :  { %206 = vmatmul.mubr.f32.vlgmr.msra.gmra.mxu0 %v100_v12 }
 0x14e   :  { %v249_v14 = vpop.f32.mrf.mxu0 }
 0x150   :  { %v250_v16 = vpop.f32.mrf.mxu0 }
 0x151   :  { %v251_v17 = vadd.f32 %v250_v16, %v249_v14 }
 0x153   :  { %v208_v18 = vadd.f32 %v251_v17, %v216_v15 }
 0x155   :  { %211 = vst [vmem:[%s414_s5] sm:$0xff] %v208_v18 }

</bundles_post_ra>
